<compile_context>
chip_gen: v7x
topology: tpu7x:2x2x1
jax: 0.10.0
libtpu: 0.0.40
codegen_flags: <defaults>
</compile_context>

<pallas_src>
import math
import jax
import jax.numpy as jnp
from jax.experimental import pallas as pl
from jax.experimental.pallas import tpu as pltpu

B, N, D = 2, 8, 32        # batch, sequence length, model size
H = 4                     # attention heads
D_FF = 64                 # feed-forward hidden size
EPS = 1e-6
DK = D // H               # per-head width
W_COLS = 3 * D + D + D_FF + D_FF   # packed weight slab width: Wqkv|Wo|W1|W2^T = 256
VEC_W = 3 * D                      # small-param slab width

# Advisory cost estimate (per call, both batches).
_FLOPS = B * (
    2 * N * D * (3 * D)        # fused QKV projection
    + 2 * (H * N) * D * N      # scores
    + 2 * (H * N) * N * D      # context
    + 2 * N * D * D            # output projection
    + 2 * N * D * D_FF         # FFN up
    + 2 * N * D_FF * D         # FFN down
)
_TRANSCENDENTALS = B * H * N * N                      # softmax exp
_BYTES = 4 * (2 * B * N * D + B * H * N * N + H * N * D + 8 * VEC_W + D * W_COLS)


def encoder_layer_kernel(x_ref, amask_ref, hsel_ref, vec_ref, w_ref, o_ref):
    x = x_ref[...]                         # (N, D) tokens of this batch
    vec = vec_ref[...]                     # (8, 3D) packed small params
    a1 = vec[0:1, :D]
    b1 = vec[1:2, :D]
    a2 = vec[2:3, :D]
    b2 = vec[3:4, :D]
    bqkv = vec[4:5, :]                     # (1, 3D)
    bo = vec[5:6, :D]
    b1f = vec[6:7, :D_FF]
    b2f = vec[7:8, :D]

    w = w_ref[...]                         # (D, 256) packed weight slab
    wqkv = w[:, 0:3 * D]                   # (D, 3D)
    wo = w[:, 3 * D:4 * D]                 # (D, D)
    w1 = w[:, 4 * D:4 * D + D_FF]          # (D, D_FF)
    w2t = w[:, 4 * D + D_FF:]              # (D, D_FF) == W2^T

    head_sel = hsel_ref[...]               # (H*N, D) constant {0,1} head pattern
    amask = amask_ref[...]                 # (H*N, N) additive mask for this batch

    def layer_norm(v, a, b):
        mean = jnp.mean(v, axis=-1, keepdims=True)
        # PyTorch x.std(-1) is the unbiased (D-1) estimator; note (std + eps).
        var = jnp.sum((v - mean) ** 2, axis=-1, keepdims=True) * (1.0 / (D - 1))
        return a * ((v - mean) / (jnp.sqrt(var) + EPS)) + b

    # ---- sublayer 0: x + MultiHeadAttention(LN1(x)) ----
    y = layer_norm(x, a1, b1)
    qkv = jnp.dot(y, wqkv, preferred_element_type=jnp.float32) + bqkv   # (N, 3D)
    q = qkv[:, 0:D]
    k = qkv[:, D:2 * D]
    v = qkv[:, 2 * D:3 * D]

    # Head-masked Q stack (H*N, D): zeros outside each row's own head kill
    # cross-head contractions, so one matmul yields all per-head score blocks.
    q_exp = jnp.broadcast_to(q[None, :, :], (H, N, D)).reshape(H * N, D) * head_sel
    scores = jax.lax.dot_general(q_exp, k, (((1,), (1,)), ((), ())),
                                 preferred_element_type=jnp.float32)    # (H*N, N)
    scores = scores * (1.0 / math.sqrt(DK)) + amask
    scores = scores - jnp.max(scores, axis=-1, keepdims=True)
    p = jnp.exp(scores)
    p = p / jnp.sum(p, axis=-1, keepdims=True)                          # exact softmax
    ctx = jnp.dot(p, v, preferred_element_type=jnp.float32) * head_sel  # (H*N, D)
    attn = jnp.sum(ctx.reshape(H, N, D), axis=0)                        # head combine
    attn = jnp.dot(attn, wo, preferred_element_type=jnp.float32) + bo
    x1 = x + attn

    # ---- sublayer 1: x + FeedForward(LN2(x)), ReLU ----
    y2 = layer_norm(x1, a2, b2)
    h1 = jnp.maximum(jnp.dot(y2, w1, preferred_element_type=jnp.float32) + b1f, 0.0)
    ff = jax.lax.dot_general(h1, w2t, (((1,), (1,)), ((), ())),
                             preferred_element_type=jnp.float32) + b2f
    o_ref[...] = (x1 + ff).astype(o_ref.dtype)


def _encoder_layer_impl(x, amask, head_sel, vecs, wslab):
    return pl.pallas_call(
        encoder_layer_kernel,
        out_shape=jax.ShapeDtypeStruct((B, N, D), jnp.float32),
        grid_spec=pltpu.PrefetchScalarGridSpec(
            num_scalar_prefetch=0,
            grid=(B,),
            in_specs=[
                pl.BlockSpec((None, N, D), lambda b: (b, 0, 0)),        # x (per batch)
                pl.BlockSpec((None, H * N, N), lambda b: (b, 0, 0)),    # amask (per batch)
                pl.BlockSpec((H * N, D), lambda b: (0, 0)),             # head_sel (shared)
                pl.BlockSpec((8, VEC_W), lambda b: (0, 0)),             # small params (shared)
                pl.BlockSpec((D, W_COLS), lambda b: (0, 0)),            # weight slab (shared)
            ],
            out_specs=pl.BlockSpec((None, N, D), lambda b: (b, 0, 0)),
        ),
        compiler_params=pltpu.CompilerParams(dimension_semantics=("parallel",)),
        cost_estimate=pl.CostEstimate(
            flops=_FLOPS, transcendentals=_TRANSCENDENTALS, bytes_accessed=_BYTES),
    )(x, amask, head_sel, vecs, wslab)


# Jitted per-call path: only the (tiny) pallas_call dispatch happens per forward.
encoder_layer_packed = jax.jit(_encoder_layer_impl)


def pack_params(params):
    """One-time parameter packing (parameter-load time, not per forward)."""
    (a1, b1, wq, bq, wk, bk, wv, bv, wo, bo, a2, b2, w1, b1f, w2, b2f) = params
    wqkv = jnp.concatenate([wq, wk, wv], axis=1)
    wslab = jnp.concatenate([wqkv, wo, w1, w2.T], axis=1).astype(jnp.float32)  # (D, 256)
    bqkv = jnp.concatenate([bq, bk, bv], axis=1)                               # (1, 3D)

    def row(p):
        p = jnp.asarray(p, jnp.float32).reshape(1, -1)
        return jnp.pad(p, ((0, 0), (0, VEC_W - p.shape[1])))

    vecs = jnp.concatenate(
        [row(a1), row(b1), row(a2), row(b2),
         row(bqkv), row(bo), row(b1f), row(b2f)], axis=0)                      # (8, 3D)

    # Static head-selection pattern: row r of the head-major stack belongs to
    # head r // N; channel c belongs to head c // DK.
    rh = jnp.arange(H * N) // N
    ch = jnp.arange(D) // DK
    head_sel = (rh[:, None] == ch[None, :]).astype(jnp.float32)                # (H*N, D)
    return vecs, wslab, head_sel


def make_attn_mask(mask):
    """Per-batch additive mask, replicated per head: (B, H*N, N)."""
    add = jnp.where(mask == 0, jnp.float32(-1e9), jnp.float32(0.0))            # (B, N, N)
    return jnp.tile(add, (1, H, 1))


def encoder_layer(x, mask, params):
    """Convenience one-shot wrapper. For repeated calls, pack once and reuse."""
    vecs, wslab, head_sel = pack_params(params)
    amask = make_attn_mask(mask)
    out = encoder_layer_packed(x.astype(jnp.float32), amask, head_sel, vecs, wslab)
    return out.astype(x.dtype)


def reference(x, mask, params):
    (a1, b1, wq, bq, wk, bk, wv, bv, wo, bo, a2, b2, w1, b1f, w2, b2f) = params

    def layer_norm(v, a, b):
        mean = jnp.mean(v, axis=-1, keepdims=True)
        var = jnp.sum((v - mean) ** 2, axis=-1, keepdims=True) / (D - 1)
        std = jnp.sqrt(var)
        return a * (v - mean) / (std + EPS) + b

    y = layer_norm(x, a1, b1)
    q = y @ wq + bq
    k = y @ wk + bk
    v = y @ wv + bv
    q = q.reshape(B, N, H, DK).transpose(0, 2, 1, 3)
    k = k.reshape(B, N, H, DK).transpose(0, 2, 1, 3)
    v = v.reshape(B, N, H, DK).transpose(0, 2, 1, 3)
    scores = jnp.einsum("bhqd,bhkd->bhqk", q, k) / math.sqrt(DK)
    scores = jnp.where(mask[:, None, :, :] == 0, -1e9, scores)
    p = jax.nn.softmax(scores, axis=-1)
    attn = jnp.einsum("bhqk,bhkd->bhqd", p, v).transpose(0, 2, 1, 3).reshape(B, N, D)
    x1 = x + (attn @ wo + bo)
    y2 = layer_norm(x1, a2, b2)
    ff = jnp.maximum(y2 @ w1 + b1f, 0.0) @ w2 + b2f
    return x1 + ff


if __name__ == "__main__":
    key = jax.random.PRNGKey(0)
    ks = jax.random.split(key, 10)
    s = 0.1

    x = jax.random.normal(ks[0], (B, N, D), jnp.float32)
    mask = jnp.ones((B, N, N), jnp.float32)   # all-valid mask (encoder uses mask=None)

    # LayerNorm params (PyTorch init: ones / zeros), kept 2-D for TPU friendliness.
    a1 = jnp.ones((1, D), jnp.float32); b1 = jnp.zeros((1, D), jnp.float32)
    a2 = jnp.ones((1, D), jnp.float32); b2 = jnp.zeros((1, D), jnp.float32)

    wq = s * jax.random.normal(ks[1], (D, D), jnp.float32)
    wk = s * jax.random.normal(ks[2], (D, D), jnp.float32)
    wv = s * jax.random.normal(ks[3], (D, D), jnp.float32)
    wo = s * jax.random.normal(ks[4], (D, D), jnp.float32)
    bq = s * jax.random.normal(ks[5], (1, D), jnp.float32)
    bk = s * jax.random.normal(ks[6], (1, D), jnp.float32)
    bv = s * jax.random.normal(ks[7], (1, D), jnp.float32)
    bo = jnp.zeros((1, D), jnp.float32)

    w1 = s * jax.random.normal(ks[8], (D, D_FF), jnp.float32)
    b1f = jnp.zeros((1, D_FF), jnp.float32)
    w2 = s * jax.random.normal(ks[9], (D_FF, D), jnp.float32)
    b2f = jnp.zeros((1, D), jnp.float32)

    params = (a1, b1, wq, bq, wk, bk, wv, bv, wo, bo, a2, b2, w1, b1f, w2, b2f)

    # Hoisted constant packing (done once, NOT per forward call).
    vecs, wslab, head_sel = pack_params(params)
    amask = make_attn_mask(mask)
    vecs, wslab, head_sel, amask = jax.block_until_ready((vecs, wslab, head_sel, amask))

    # Jitted forward: a single pallas_call per invocation.
    out = encoder_layer_packed(x, amask, head_sel, vecs, wslab)
    out = jax.block_until_ready(out)

    ref = reference(x, mask, params)
    assert out.shape == (B, N, D)
    assert jnp.allclose(out, ref, atol=1e-4, rtol=1e-4), "mismatch vs pure-JAX reference"
    print("KERNEL_OK")
</pallas_src>

<mosaic_0001>
module attributes {stable_mosaic.version = 11 : i64} {
  func.func @encoder_layer_kernel(%arg0: i32, %arg1: memref<1x8x32xf32, #tpu.memory_space<vmem>>, %arg2: memref<1x32x8xf32, #tpu.memory_space<vmem>>, %arg3: memref<32x32xf32, #tpu.memory_space<vmem>>, %arg4: memref<8x96xf32, #tpu.memory_space<vmem>>, %arg5: memref<32x256xf32, #tpu.memory_space<vmem>>, %arg6: memref<1x8x32xf32, #tpu.memory_space<vmem>>) attributes {dimension_semantics = [#tpu.dimension_semantics<parallel>], iteration_bounds = array<i64: 2>, scalar_prefetch = 0 : i64, scratch_operands = 0 : i64, tpu.core_type = #tpu.core_type<tc>, window_params = [{transform_indices = @transform_0, window_bounds = array<i64: 1, 8, 32>}, {transform_indices = @transform_1, window_bounds = array<i64: 1, 32, 8>}, {pipeline_mode = #tpu.pipeline_mode<synchronous>, transform_indices = @transform_2, window_bounds = array<i64: 32, 32>}, {pipeline_mode = #tpu.pipeline_mode<synchronous>, transform_indices = @transform_3, window_bounds = array<i64: 8, 96>}, {pipeline_mode = #tpu.pipeline_mode<synchronous>, transform_indices = @transform_4, window_bounds = array<i64: 32, 256>}, {transform_indices = @transform_5, window_bounds = array<i64: 1, 8, 32>}]} {
    %c0 = arith.constant 0 : index
    %c0_0 = arith.constant 0 : index
    %c0_1 = arith.constant 0 : index
    %0 = vector.load %arg1[%c0, %c0_0, %c0_1] : memref<1x8x32xf32, #tpu.memory_space<vmem>>, vector<1x8x32xf32>
    %1 = vector.shape_cast %0 : vector<1x8x32xf32> to vector<8x32xf32>
    %c0_2 = arith.constant 0 : index
    %c0_3 = arith.constant 0 : index
    %2 = vector.load %arg4[%c0_2, %c0_3] : memref<8x96xf32, #tpu.memory_space<vmem>>, vector<8x96xf32>
    %3 = vector.extract_strided_slice %2 {offsets = [0, 0], sizes = [1, 32], strides = [1, 1]} : vector<8x96xf32> to vector<1x32xf32>
    %4 = vector.extract_strided_slice %2 {offsets = [1, 0], sizes = [1, 32], strides = [1, 1]} : vector<8x96xf32> to vector<1x32xf32>
    %5 = vector.extract_strided_slice %2 {offsets = [2, 0], sizes = [1, 32], strides = [1, 1]} : vector<8x96xf32> to vector<1x32xf32>
    %6 = vector.extract_strided_slice %2 {offsets = [3, 0], sizes = [1, 32], strides = [1, 1]} : vector<8x96xf32> to vector<1x32xf32>
    %7 = vector.extract_strided_slice %2 {offsets = [4, 0], sizes = [1, 96], strides = [1, 1]} : vector<8x96xf32> to vector<1x96xf32>
    %8 = vector.extract_strided_slice %2 {offsets = [5, 0], sizes = [1, 32], strides = [1, 1]} : vector<8x96xf32> to vector<1x32xf32>
    %9 = vector.extract_strided_slice %2 {offsets = [6, 0], sizes = [1, 64], strides = [1, 1]} : vector<8x96xf32> to vector<1x64xf32>
    %10 = vector.extract_strided_slice %2 {offsets = [7, 0], sizes = [1, 32], strides = [1, 1]} : vector<8x96xf32> to vector<1x32xf32>
    %c0_4 = arith.constant 0 : index
    %c0_5 = arith.constant 0 : index
    %11 = vector.load %arg5[%c0_4, %c0_5] : memref<32x256xf32, #tpu.memory_space<vmem>>, vector<32x256xf32>
    %12 = vector.extract_strided_slice %11 {offsets = [0, 0], sizes = [32, 96], strides = [1, 1]} : vector<32x256xf32> to vector<32x96xf32>
    %13 = vector.extract_strided_slice %11 {offsets = [0, 96], sizes = [32, 32], strides = [1, 1]} : vector<32x256xf32> to vector<32x32xf32>
    %14 = vector.extract_strided_slice %11 {offsets = [0, 128], sizes = [32, 64], strides = [1, 1]} : vector<32x256xf32> to vector<32x64xf32>
    %15 = vector.extract_strided_slice %11 {offsets = [0, 192], sizes = [32, 64], strides = [1, 1]} : vector<32x256xf32> to vector<32x64xf32>
    %c0_6 = arith.constant 0 : index
    %c0_7 = arith.constant 0 : index
    %16 = vector.load %arg3[%c0_6, %c0_7] : memref<32x32xf32, #tpu.memory_space<vmem>>, vector<32x32xf32>
    %c0_8 = arith.constant 0 : index
    %c0_9 = arith.constant 0 : index
    %c0_10 = arith.constant 0 : index
    %17 = vector.load %arg2[%c0_8, %c0_9, %c0_10] : memref<1x32x8xf32, #tpu.memory_space<vmem>>, vector<1x32x8xf32>
    %18 = vector.shape_cast %17 : vector<1x32x8xf32> to vector<32x8xf32>
    %cst = arith.constant dense<0.000000e+00> : vector<8xf32>
    %19 = vector.multi_reduction <add>, %1, %cst [1] : vector<8x32xf32> to vector<8xf32>
    %20 = vector.shape_cast %19 : vector<8xf32> to vector<8x1xf32>
    %cst_11 = arith.constant 3.200000e+01 : f32
    %21 = vector.broadcast %cst_11 : f32 to vector<8x1xf32>
    %22 = arith.divf %20, %21 : vector<8x1xf32>
    %23 = vector.broadcast %22 : vector<8x1xf32> to vector<8x32xf32>
    %24 = arith.subf %1, %23 : vector<8x32xf32>
    %25 = arith.mulf %24, %24 : vector<8x32xf32>
    %cst_12 = arith.constant dense<0.000000e+00> : vector<8xf32>
    %26 = vector.multi_reduction <add>, %25, %cst_12 [1] : vector<8x32xf32> to vector<8xf32>
    %27 = vector.shape_cast %26 : vector<8xf32> to vector<8x1xf32>
    %cst_13 = arith.constant 0.0322580636 : f32
    %28 = vector.broadcast %cst_13 : f32 to vector<8x1xf32>
    %29 = arith.mulf %27, %28 : vector<8x1xf32>
    %30 = vector.broadcast %22 : vector<8x1xf32> to vector<8x32xf32>
    %31 = arith.subf %1, %30 : vector<8x32xf32>
    %32 = math.sqrt %29 : vector<8x1xf32>
    %cst_14 = arith.constant 9.99999997E-7 : f32
    %33 = vector.broadcast %cst_14 : f32 to vector<8x1xf32>
    %34 = arith.addf %32, %33 : vector<8x1xf32>
    %35 = vector.broadcast %34 : vector<8x1xf32> to vector<8x32xf32>
    %36 = arith.divf %31, %35 : vector<8x32xf32>
    %37 = vector.broadcast %3 : vector<1x32xf32> to vector<8x32xf32>
    %38 = arith.mulf %37, %36 : vector<8x32xf32>
    %39 = vector.broadcast %4 : vector<1x32xf32> to vector<8x32xf32>
    %40 = arith.addf %38, %39 : vector<8x32xf32>
    %cst_15 = arith.constant dense<0.000000e+00> : vector<8x96xf32>
    %41 = tpu.matmul %40, %12, %cst_15 {dimension_numbers = #tpu.dot_dimension_numbers<[1], [0], [0], [1], [0, 0, 1, 1], [], []>} : vector<8x32xf32>, vector<32x96xf32>, vector<8x96xf32> -> vector<8x96xf32>
    %42 = vector.broadcast %7 : vector<1x96xf32> to vector<8x96xf32>
    %43 = arith.addf %41, %42 : vector<8x96xf32>
    %44 = vector.extract_strided_slice %43 {offsets = [0, 0], sizes = [8, 32], strides = [1, 1]} : vector<8x96xf32> to vector<8x32xf32>
    %45 = vector.extract_strided_slice %43 {offsets = [0, 32], sizes = [8, 32], strides = [1, 1]} : vector<8x96xf32> to vector<8x32xf32>
    %46 = vector.extract_strided_slice %43 {offsets = [0, 64], sizes = [8, 32], strides = [1, 1]} : vector<8x96xf32> to vector<8x32xf32>
    %47 = vector.shape_cast %44 : vector<8x32xf32> to vector<1x8x32xf32>
    %48 = vector.shape_cast %47 : vector<1x8x32xf32> to vector<1x8x32xf32>
    %49 = vector.broadcast %48 : vector<1x8x32xf32> to vector<4x8x32xf32>
    %50 = vector.shape_cast %49 : vector<4x8x32xf32> to vector<32x32xf32>
    %51 = arith.mulf %50, %16 : vector<32x32xf32>
    %cst_16 = arith.constant dense<0.000000e+00> : vector<32x8xf32>
    %52 = tpu.matmul %51, %45, %cst_16 {dimension_numbers = #tpu.dot_dimension_numbers<[1], [1], [0], [0], [0, 0, 1, 0], [], []>} : vector<32x32xf32>, vector<8x32xf32>, vector<32x8xf32> -> vector<32x8xf32>
    %cst_17 = arith.constant 0.353553385 : f32
    %53 = vector.broadcast %cst_17 : f32 to vector<32x8xf32>
    %54 = arith.mulf %52, %53 : vector<32x8xf32>
    %55 = arith.addf %54, %18 : vector<32x8xf32>
    %cst_18 = arith.constant dense<0xFF800000> : vector<32xf32>
    %56 = vector.multi_reduction <maximumf>, %55, %cst_18 [1] : vector<32x8xf32> to vector<32xf32>
    %57 = vector.shape_cast %56 : vector<32xf32> to vector<32x1xf32>
    %58 = vector.broadcast %57 : vector<32x1xf32> to vector<32x8xf32>
    %59 = arith.subf %55, %58 : vector<32x8xf32>
    %60 = math.exp %59 : vector<32x8xf32>
    %cst_19 = arith.constant dense<0.000000e+00> : vector<32xf32>
    %61 = vector.multi_reduction <add>, %60, %cst_19 [1] : vector<32x8xf32> to vector<32xf32>
    %62 = vector.shape_cast %61 : vector<32xf32> to vector<32x1xf32>
    %63 = vector.broadcast %62 : vector<32x1xf32> to vector<32x8xf32>
    %64 = arith.divf %60, %63 : vector<32x8xf32>
    %cst_20 = arith.constant dense<0.000000e+00> : vector<32x32xf32>
    %65 = tpu.matmul %64, %46, %cst_20 {dimension_numbers = #tpu.dot_dimension_numbers<[1], [0], [0], [1], [0, 0, 1, 1], [], []>} : vector<32x8xf32>, vector<8x32xf32>, vector<32x32xf32> -> vector<32x32xf32>
    %66 = arith.mulf %65, %16 : vector<32x32xf32>
    %67 = vector.shape_cast %66 : vector<32x32xf32> to vector<4x8x32xf32>
    %cst_21 = arith.constant dense<0.000000e+00> : vector<8x32xf32>
    %68 = vector.multi_reduction <add>, %67, %cst_21 [0] : vector<4x8x32xf32> to vector<8x32xf32>
    %cst_22 = arith.constant dense<0.000000e+00> : vector<8x32xf32>
    %69 = tpu.matmul %68, %13, %cst_22 {dimension_numbers = #tpu.dot_dimension_numbers<[1], [0], [0], [1], [0, 0, 1, 1], [], []>} : vector<8x32xf32>, vector<32x32xf32>, vector<8x32xf32> -> vector<8x32xf32>
    %70 = vector.broadcast %8 : vector<1x32xf32> to vector<8x32xf32>
    %71 = arith.addf %69, %70 : vector<8x32xf32>
    %72 = arith.addf %1, %71 : vector<8x32xf32>
    %cst_23 = arith.constant dense<0.000000e+00> : vector<8xf32>
    %73 = vector.multi_reduction <add>, %72, %cst_23 [1] : vector<8x32xf32> to vector<8xf32>
    %74 = vector.shape_cast %73 : vector<8xf32> to vector<8x1xf32>
    %cst_24 = arith.constant 3.200000e+01 : f32
    %75 = vector.broadcast %cst_24 : f32 to vector<8x1xf32>
    %76 = arith.divf %74, %75 : vector<8x1xf32>
    %77 = vector.broadcast %76 : vector<8x1xf32> to vector<8x32xf32>
    %78 = arith.subf %72, %77 : vector<8x32xf32>
    %79 = arith.mulf %78, %78 : vector<8x32xf32>
    %cst_25 = arith.constant dense<0.000000e+00> : vector<8xf32>
    %80 = vector.multi_reduction <add>, %79, %cst_25 [1] : vector<8x32xf32> to vector<8xf32>
    %81 = vector.shape_cast %80 : vector<8xf32> to vector<8x1xf32>
    %cst_26 = arith.constant 0.0322580636 : f32
    %82 = vector.broadcast %cst_26 : f32 to vector<8x1xf32>
    %83 = arith.mulf %81, %82 : vector<8x1xf32>
    %84 = vector.broadcast %76 : vector<8x1xf32> to vector<8x32xf32>
    %85 = arith.subf %72, %84 : vector<8x32xf32>
    %86 = math.sqrt %83 : vector<8x1xf32>
    %cst_27 = arith.constant 9.99999997E-7 : f32
    %87 = vector.broadcast %cst_27 : f32 to vector<8x1xf32>
    %88 = arith.addf %86, %87 : vector<8x1xf32>
    %89 = vector.broadcast %88 : vector<8x1xf32> to vector<8x32xf32>
    %90 = arith.divf %85, %89 : vector<8x32xf32>
    %91 = vector.broadcast %5 : vector<1x32xf32> to vector<8x32xf32>
    %92 = arith.mulf %91, %90 : vector<8x32xf32>
    %93 = vector.broadcast %6 : vector<1x32xf32> to vector<8x32xf32>
    %94 = arith.addf %92, %93 : vector<8x32xf32>
    %cst_28 = arith.constant dense<0.000000e+00> : vector<8x64xf32>
    %95 = tpu.matmul %94, %14, %cst_28 {dimension_numbers = #tpu.dot_dimension_numbers<[1], [0], [0], [1], [0, 0, 1, 1], [], []>} : vector<8x32xf32>, vector<32x64xf32>, vector<8x64xf32> -> vector<8x64xf32>
    %96 = vector.broadcast %9 : vector<1x64xf32> to vector<8x64xf32>
    %97 = arith.addf %95, %96 : vector<8x64xf32>
    %cst_29 = arith.constant 0.000000e+00 : f32
    %98 = vector.broadcast %cst_29 : f32 to vector<8x64xf32>
    %99 = arith.maximumf %97, %98 : vector<8x64xf32>
    %cst_30 = arith.constant dense<0.000000e+00> : vector<8x32xf32>
    %100 = tpu.matmul %99, %15, %cst_30 {dimension_numbers = #tpu.dot_dimension_numbers<[1], [1], [0], [0], [0, 0, 1, 0], [], []>} : vector<8x64xf32>, vector<32x64xf32>, vector<8x32xf32> -> vector<8x32xf32>
    %101 = vector.broadcast %10 : vector<1x32xf32> to vector<8x32xf32>
    %102 = arith.addf %100, %101 : vector<8x32xf32>
    %103 = arith.addf %72, %102 : vector<8x32xf32>
    %c0_31 = arith.constant 0 : index
    %c0_32 = arith.constant 0 : index
    %c0_33 = arith.constant 0 : index
    %104 = vector.load %arg6[%c0_31, %c0_32, %c0_33] : memref<1x8x32xf32, #tpu.memory_space<vmem>>, vector<1x8x32xf32>
    %105 = vector.shape_cast %104 : vector<1x8x32xf32> to vector<8x32xf32>
    %106 = vector.shape_cast %103 : vector<8x32xf32> to vector<1x8x32xf32>
    tpu.vector_store %arg6[%c0_31, %c0_32, %c0_33], %106 {strides = array<i32>} : memref<1x8x32xf32, #tpu.memory_space<vmem>>, vector<1x8x32xf32>,
    return
  }
  func.func @transform_0(%arg0: i32) -> (i32, i32, i32) {
    %c0_i32 = arith.constant 0 : i32
    %c0_i32_0 = arith.constant 0 : i32
    %c0_i32_1 = arith.constant 0 : i32
    return %arg0, %c0_i32, %c0_i32_0 : i32, i32, i32
  }
  func.func @transform_1(%arg0: i32) -> (i32, i32, i32) {
    %c0_i32 = arith.constant 0 : i32
    %c0_i32_0 = arith.constant 0 : i32
    %c0_i32_1 = arith.constant 0 : i32
    return %arg0, %c0_i32, %c0_i32_0 : i32, i32, i32
  }
  func.func @transform_2(%arg0: i32) -> (i32, i32) {
    %c0_i32 = arith.constant 0 : i32
    %c0_i32_0 = arith.constant 0 : i32
    %c0_i32_1 = arith.constant 0 : i32
    return %c0_i32, %c0_i32_0 : i32, i32
  }
  func.func @transform_3(%arg0: i32) -> (i32, i32) {
    %c0_i32 = arith.constant 0 : i32
    %c0_i32_0 = arith.constant 0 : i32
    %c0_i32_1 = arith.constant 0 : i32
    return %c0_i32, %c0_i32_0 : i32, i32
  }
  func.func @transform_4(%arg0: i32) -> (i32, i32) {
    %c0_i32 = arith.constant 0 : i32
    %c0_i32_0 = arith.constant 0 : i32
    %c0_i32_1 = arith.constant 0 : i32
    return %c0_i32, %c0_i32_0 : i32, i32
  }
  func.func @transform_5(%arg0: i32) -> (i32, i32, i32) {
    %c0_i32 = arith.constant 0 : i32
    %c0_i32_0 = arith.constant 0 : i32
    %c0_i32_1 = arith.constant 0 : i32
    return %arg0, %c0_i32, %c0_i32_0 : i32, i32, i32
  }
}

</mosaic_0001>

<bundles_post_ra>
// kernel: _encoder_layer_impl.1
= control target key start
LH: loop header
LB: loop body
LE: loop exit
PB: predicated region body
PF: predicated region fallthrough
CT: control target
= control target key end

     0   :  { %10 = vsyncpa [#allocation3], 0  ;;  %s1731_s0 = inlined_call_operand.vmem [shape: f32[2,8,32], index: 0, kind: input, shape index: {}]   ;;  %s1732_s1 = inlined_call_operand.vmem [shape: f32[2,32,8], index: 1, kind: input, shape index: {}]   ;;  %s1733_s2 = inlined_call_operand.hbm [shape: f32[32,32], index: 2, kind: input, shape index: {}]   ;;  %s1734_s3 = inlined_call_operand.vmem [shape: f32[8,96], index: 3, kind: input, shape index: {}]   ;;  %s1735_s4 = inlined_call_operand.vmem [shape: f32[32,256], index: 4, kind: input, shape index: {}]   ;;  %s1736_s5 = inlined_call_operand.hbm [shape: f32[2,8,32], index: 5, kind: output, shape index: {}]  }
   0x1   :  { %11 = vsyncpa [#allocation4], 0 }
   0x2   :  { %13 = vsyncpa [#allocation4 + $0x1], 0  ;;  %s1437_s18 = smov 0   ;;  %s1439_s19 = smov 0  }
   0x3   :  { %s1441_s20 = smov 0   ;;  %s1443_s21 = smov 0  }
   0x4 LB: > { %s1458_s22 = sadd.s32 4294967295, %s1395_s21   ;;  %s1051_s23 = sadd.s32 4294967294, %s1395_s21   ;;  %s1395_s21 = sphi %s1443_s21, %s1752_s21   ;;  %s1391_s20 = sphi %s1441_s20, %s1751_s20   ;;  %s1387_s19 = sphi %s1439_s19, %s1750_s19   ;;  %s1383_s18 = sphi %s1437_s18, %s1749_s18  }
   0x5   : > { %s1462_s24 = sadd.s32 1, %s1395_s21   ;;  %s141_s25 = sadd.s32 1, %s1391_s20 }
   0x6   : > { %s138_s26 = ssub.s32 %s1395_s21, %s1462_s24  ;;  %p151_p0 = scmp.ne.s32.totalorder %s1391_s20, %s1387_s19 }
   0x7   : > { %p139_p1 = scmp.eq.s32.totalorder %s138_s26, 0  ;;  %p152_p2 = scmp.eq.s32.totalorder %s1458_s22, 1 }
   0x8   : > { %p157_p3 = scmp.ne.s32.totalorder %s1387_s19, %s1383_s18  ;;  %p158_p4 = scmp.eq.s32.totalorder %s1051_s23, 1 }
   0x9   : > { %s1473_s27 = scalar_select %p139_p1, %s1391_s20, %s141_s25  }
   0xa   : > { %p1475_p5 = por %p152_p2, %p151_p0  ;;  %p1479_p6 = por %p158_p4, %p157_p3 }
   0xb   : > { %p1052_p7 = scmp.ge.s32.totalorder %s1395_s21, 1  ;;  %p165_p8 = scmp.lt.s32.totalorder %s1395_s21, 3 }
   0xc   : > { %s1740_s28 = scalar_select %p1475_p5, 1, 0 }
   0xd   : > { %s1741_s29 = scalar_select %p1479_p6, 1, 0 }
   0xe   : > { %p1737_p9 = scmp.eq.s32.totalorder %s1458_s22, 0  ;;  %p1486_p10 = pnand %p1052_p7, %p165_p8 }
   0xf   : > { %s1397_s6 = smov [#allocation2]   ;;  %s1301_s11 = scalar_lea.hbm %s1733_s2, 512 }
  0x10   : > { %s1742_s30 = scalar_select %p1486_p10, 1, 0 }
  0x11   : > { %s177_s7 = sshll.u32 %s1397_s6, 4  ;;  %p1205_p11 = pneg %p1486_p10  ;;  %s178_s7 = int_to_ptr.vmem [resolvable:$true] %s177_s7 }
  0x12   : > { %p1302_p13 = scmp.ne.s32.totalorder %s1733_s2, %s1301_s11  ;;  %p1308_p3 = scmp.lt.u32.totalorder %s1301_s11, %s1733_s2 }
  0x13   : > { %p1494_p12 = pnand %p1737_p9, %p1205_p11 }
  0x15   : > { %p1303_p0 = pneg %p1494_p12 }
  0x17   : > { %p1304_p1 = pnand %p1303_p0, %p1302_p13 }
  0x19   : > { %p1305_p2 = pneg %p1304_p1 }
  0x1b   : > { %p1310_p4 = pnand %p1308_p3, %p1305_p2 }
  0x1d   : > { %1313 = shalt.err (!%p1310_p4)
}
  0x1e   : > { %s1314_s16 = scalar_lea.vmem %s178_s7, 512  ;;  %p1322_p9 = scmp.lt.s32.totalorder %s178_s7, %s178_s7 }
  0x1f   : > { %p1315_p7 = scmp.ne.s32.totalorder %s178_s7, %s1314_s16  ;;  %p1323_p6 = scmp.lt.s32.totalorder %s1314_s16, %s1314_s16 }
  0x21   : > { %p1317_p8 = pnand %p1315_p7, %p1303_p0  ;;  %p1324_p5 = por %p1323_p6, %p1322_p9 }
  0x23   : > { %p1318_p11 = pneg %p1317_p8 }
  0x25   : > { %p1325_p10 = pnand %p1324_p5, %p1318_p11 }
  0x27   : > { %1328 = shalt.err (!%p1325_p10)
}
  0x28   : > { %s1398_s17 = smov 128   ;;  %s1399_s23 = smov 8  }
  0x29   : > { %1208 = dma.hbm_to_vmem [thread:$0]  (!%p1494_p12), %s1733_s2, 512, %s178_s7, [#allocation3], %s1398_s17, %s1398_s17, %s1399_s23  }
  0x2a   : > { %p1744_p13 = scmp.ne.s32.totalorder %s1742_s30, 0 }
  0x2b   : > { %p1745_p1 = scmp.eq.s32.totalorder (!%p1744_p13), %s1458_s22, 0 }
  0x2c   : > { %214 = sbr.rel (%p1744_p13) target bundleno = 2474 (0x9aa), region = 40 }
  0x33   : > { %1374 = dma.done.wait (%p1745_p1), [#allocation3], 512   ;;  %p1746_p0 = pmov %p1745_p1 }
  0x34   : > { %p246_p5 = scmp.lt.s32.totalorder %s1458_s22, 1  ;;  %vm273_vm0 = vcmask 261120   ;;  %v1537_v7 = vld [vmem:[%s1735_s4] sm:$0xff]  ;;  %v1542_v8 = vld [vmem:[%s1735_s4 + $0x10] sm:$0xff]  ;;  %v1400_v10 = vmov 0.0|0.0   ;;  %vm1401_vm1 = vmmov 0   ;;  %v295_v23 = vlaneseq }
  0x35   : > { %1376 = vsyncadd (%p1746_p0), [#allocation3], 4294966784  ;;  %v1547_v9 = vld [vmem:[%s1735_s4 + $0x20] sm:$0xff]  ;;  %1173 = vmatprep.subr.bf16.mxu0 %v1400_v10  ;;  %v1257_v11 = vpack.i.bf16 %v1542_v8, %v1537_v7  ;;  %v1174_v12 = vpack.c.bf16 %v1542_v8, %v1537_v7  ;;  %v1557_v13 = vld [vmem:[%s1735_s4 + $0x30] sm:$0xff]  ;;  %v1402_v14 = vmov 0.0   ;;  %s1403_s26 = smov 96  }
  0x36   : > { %s1522_s6 = scalar_select %p246_p5, %s1458_s22, 1  ;;  %1121 = vmatprep.mubr.msk.f32.mxu0 %vm1401_vm1, %v1402_v14  ;;  %v1177_v15 = vpack.c.bf16 %v1557_v13, %v1547_v9  ;;  %v1564_v25 = vshrl.u32 %v295_v23, 7  ;;  %v1570_v27 = vld [vmem:[%s1734_s3] sm:$0xff]  ;;  %v1586_v43 = vld [vmem:[#allocation2 + $0x8] sm:$0xff]  ;;  %v1589_v44 = vld [vmem:[#allocation2 + $0x10] sm:$0xff]  ;;  %vm496_vm4 = vcmask 64512  }
  0x37   : > { %1175 = vmatpush3.bf16.msra.mxu0 %v1174_v12  ;;  %v1578_v38 = vld [vmem:[#allocation2] sm:$0xff]  ;;  %v1597_v47 = vld [vmem:[#allocation2 + $0x18] sm:$0xff]  ;;  %s1405_s30 = smov 32   ;;  %vm870_vm7 = vcmask 523264   ;;  %s243_s25 = sand.u32 1, %s1387_s19  }
  0x38   : > { %s1058_s8 = sshll.u32 %s1522_s6, 3  ;;  %1176 = vmatprep.subr.bf16.mxu0 %v1400_v10  ;;  %v297_v26 = vsub.s32 0, %v1564_v25  ;;  %v302_v28 = vsub.s32 1, %v1564_v25  ;;  %v307_v35 = vsub.s32 4, %v1564_v25  ;;  %vm1193_vm8 = vmpackc.low %vm870_vm7, %vm870_vm7  ;;  %s955_s11 = scalar_lea.sflag [#allocation4], %s243_s25 }
  0x39   : > { %s249_s7 = scalar_lea.vmem %s1731_s0, %s1058_s8  ;;  %s1082_s8 = sshll.u32 %s1522_s6, 5 }
  0x3a   : > { %v1528_v0 = vld [vmem:[%s249_s7] sm:$0xff]  ;;  %v298_v29 = vrot.slane %v1570_v27, %v297_v26  ;;  %v303_v32 = vrot.slane %v1570_v27, %v302_v28  ;;  %v308_v36 = vrot.slane %v1570_v27, %v307_v35  ;;  %s254_s7 = scalar_lea.vmem %s1732_s1, %s1082_s8  ;;  %s1404_s6 = smov 64   ;;  %v1262_v35 = vpack.i.bf16 %v1557_v13, %v1547_v9 }
  0x3b   : > { %v274_v1 = vsel %vm273_vm0, %v1528_v0, 0.0  ;;  %1178 = vmatpush3.bf16.msra.mxu0 %v1177_v15  ;;  %v270_v50 = vld [vmem:[%s254_s7 + $0x8] sm:$0xff]  ;;  %v269_v53 = vld [vmem:[%s254_s7] sm:$0xff]  ;;  %v272_v58 = vld [vmem:[%s254_s7 + $0x18] sm:$0xff]  ;;  %s1079_s8 = sshll.u32 %s1458_s22, 7  ;;  %p1747_p9 = scmp.ne.s32.totalorder %s1740_s28, 0 }
  0x3c   : > { %275 = vadd.xlane.f32.xlu0 %v274_v1  ;;  %v271_v62 = vld [vmem:[%s254_s7 + $0x10] sm:$0xff]  ;;  %s1406_s12 = smov [#allocation5]  }
  0x3d   : > { %s1333_s13 = sshll.u32 %s1406_s12, 4  ;;  %s1334_s13 = int_to_ptr.vmem [resolvable:$false] %s1333_s13 }
  0x3e   : > { %s1335_s14 = scalar_lea.vmem %s1334_s13, 256 }
  0xc9   : > { %v276_v2 = vpop.xlane.xlu0 %275 }
  0xca   : > { %v278_v3 = vmul.f32 0.03125, %v276_v2 }
  0xcc   : > { %v279_v4 = vsub.f32 %v1528_v0, %v278_v3 }
  0xce   : > { %v280_v5 = vmul.f32 %v279_v4, %v279_v4 }
  0xd0   : > { %v281_v6 = vsel %vm273_vm0, %v280_v5, 0.0 }
  0xd1   : > { %282 = vadd.xlane.f32.xlu0 %v281_v6 }
 0x15e   : > { %v283_v16 = vpop.xlane.xlu0 %282 }
 0x15f   : > { %v284_v17 = vmul.f32 0.032258064, %v283_v16 }
 0x161   : > { %1277 = vrsqrt.f32 %v284_v17  ;;  %vm287_vm2 = vcmp.eq.f32.partialorder %v284_v17, inf  ;;  %v290_v20 = vand.u32 2147483648, %v284_v17  ;;  %vm289_vm3 = vcmp.eq.f32.partialorder %v284_v17, 0.0 }
 0x16b   : > { %v1278_v18 = vpop.eup %1277 }
 0x16c   : > { %v286_v19 = vmul.f32 %v1278_v18, %v284_v17 }
 0x16e   : > { %v288_v21 = vsel %vm287_vm2, %v284_v17, %v286_v19 }
 0x16f   : > { %v291_v22 = vsel %vm289_vm3, %v290_v20, %v288_v21 }
 0x170   : > { %v292_v24 = vadd.f32 1e-06, %v291_v22 }
 0x172   : > { %1279 = vrcp.f32 %v292_v24 }
 0x17c   : > { %v1280_v30 = vpop.eup %1279 }
 0x17d   : > { %v294_v31 = vmul.f32 %v1280_v30, %v279_v4 }
 0x17f   : > { %v299_v33 = vmul.f32 %v298_v29, %v294_v31 }
 0x181   : > { %v304_v34 = vadd.f32 %v303_v32, %v299_v33 }
 0x183   : > { %1122 = vmatmul.mubr.msk.f32.vlgmr.msra.gmra.mrb[0].mxu0 %vm273_vm0, %v304_v34 }
 0x256   : > { %v378_v37 = vpop.f32.mrb[0].mxu0 }
 0x257   : > { %v1580_v39 = vadd.f32 %v378_v37, %v308_v36  ;;  %v1123_v40 = vpop.f32.mrb[1].mxu0 }
 0x259   : > { %387 = vrot.lane.b32.xlu1 %v1580_v39, %s1403_s26  ;;  %v382_v41 = vmul.f32 %v1580_v39, %v1578_v38  ;;  %v383_v45 = vmul.f32 %v1580_v39, %v1586_v43  ;;  %v384_v46 = vmul.f32 %v1580_v39, %v1589_v44  ;;  %v385_v48 = vmul.f32 %v1580_v39, %v1597_v47  ;;  %s1057_s26 = sshll.u32 %s243_s25, 3 }
 0x25a   : > { %s245_s9 = scalar_lea.vmem [#allocation5], %s1057_s26 }
 0x25b   : > { %1126 = vmatprep.mubr.msk.f32.mxu1 %vm273_vm0, %v382_v41  ;;  %s968_s10 = sshll.u32 %s245_s9, 4  ;;  %s1690_s10 = int_to_ptr.vmem [resolvable:$true] %s968_s10 }
 0x25c   : > { %s1329_s22 = scalar_lea.vmem %s1690_s10, 128  ;;  %p1336_p2 = scmp.lt.s32.totalorder %s1690_s10, %s1334_s13 }
 0x25d   : > { %p1330_p6 = scmp.ne.s32.totalorder %s1690_s10, %s1329_s22  ;;  %p1337_p3 = scmp.lt.s32.totalorder %s1335_s14, %s1329_s22 }
 0x25f   : > { %p1331_p10 = pnand %p1330_p6, %p1747_p9  ;;  %p1338_p4 = por %p1337_p3, %p1336_p2 }
 0x261   : > { %p1332_p12 = pneg %p1331_p10 }
 0x263   : > { %p1339_p7 = pnand %p1338_p4, %p1332_p12 }
 0x2cb   : > { %v388_v42 = vpop.permute.xlu1 %387 }
 0x2cc   : > { %1124 = vmatprep.subr.msk.mxu1 %vm273_vm0, %v388_v42 }
 0x2cd   : > { %1125 = vmatpush3.xpose.msk.msra.mxu1 %vm273_vm0, %v388_v42 }
 0x2ce   : > { %1179 = vmatprep.subr.bf16.mxu1 %v1400_v10 }
 0x2d0   : > { %1127 = vmatmul.mubr.msk.f32.vlgmr.msra.gmra.mrb[0].mxu1 %vm273_vm0, %v383_v45 }
 0x2d1   : > { %1129 = vmatprep.mubr.msk.f32.mxu1 %vm273_vm0, %v384_v46 }
 0x2d4   : > { %1130 = vmatmul.mubr.msk.f32.gmra.mrb[2].mxu1 %vm273_vm0, %v385_v48 }
 0x2d5   : > { %1148 = vmatprep.mubr.msk.f32.mxu1 %vm1401_vm1, %v1402_v14 }
 0x3a3   : > { %v1128_v49 = vpop.f32.mrb[0].mxu1 }
 0x3a4   : > { %v489_v51 = vmul.f32 0.35355338, %v1128_v49  ;;  %v469_v52 = vpop.f32.mrb[1].mxu1 }
 0x3a5   : > { %v488_v54 = vmul.f32 0.35355338, %v469_v52 }
 0x3a6   : > { %v493_v55 = vadd.f32 %v489_v51, %v270_v50 }
 0x3a7   : > { %v1131_v56 = vpop.f32.mrb[2].mxu1  ;;  %v492_v57 = vadd.f32 %v488_v54, %v269_v53 }
 0x3a8   : > { %v491_v59 = vmul.f32 0.35355338, %v1131_v56  ;;  %v479_v60 = vpop.f32.mrb[3].mxu1  ;;  %v500_v61 = vsel %vm496_vm4, %v493_v55, -inf }
 0x3a9   : > { %v490_v63 = vmul.f32 0.35355338, %v479_v60  ;;  %501 = vmax.xlane.f32.xlu0 %v500_v61  ;;  %v497_v1 = vsel %vm496_vm4, %v492_v57, -inf }
 0x3aa   : > { %498 = vmax.xlane.f32.xlu1 %v497_v1  ;;  %v495_v2 = vadd.f32 %v491_v59, %v272_v58 }
 0x3ab   : > { %v494_v3 = vadd.f32 %v490_v63, %v271_v62 }
 0x3ac   : > { %v506_v5 = vsel %vm496_vm4, %v495_v2, -inf }
 0x3ad   : > { %v503_v4 = vsel %vm496_vm4, %v494_v3, -inf }
 0x3ae   : > { %504 = vmax.xlane.f32.xlu0 %v503_v4 }
 0x3b2   : > { %507 = vmax.xlane.f32.xlu0 %v506_v5 }
 0x3bb   : > { %1258 = vrot.lane.b32.xlu1 %v1257_v11, %s1405_s30 }
 0x3bf   : > { %1263 = vrot.lane.b32.xlu1 %v1262_v35, %s1405_s30  ;;  %s1688_s30 = scalar_lea.hbm %s1736_s5, %s1079_s8 }
 0x436   : > { %v502_v6 = vpop.xlane.xlu0 %501 }
 0x437   : > { %v510_v12 = vsub.f32 %v493_v55, %v502_v6  ;;  %v499_v15 = vpop.xlane.xlu1 %498 }
 0x438   : > { %v509_v16 = vsub.f32 %v492_v57, %v499_v15 }
 0x439   : > { %v515_v17 = vmul.f32 1.442695, %v510_v12 }
 0x43a   : > { %v513_v18 = vmul.f32 1.442695, %v509_v16 }
 0x43b   : > { %1281 = vpow2.f32 %v515_v17  ;;  %v505_v19 = vpop.xlane.xlu0 %504  ;;  %v1259_v13 = vpop.permute.xlu1 %1258 }
 0x43c   : > { %1283 = vpow2.f32 %v513_v18  ;;  %v511_v20 = vsub.f32 %v494_v3, %v505_v19  ;;  %v1261_v49 = vunpack.i.h.bf16 %v1259_v13  ;;  %v1260_v50 = vunpack.i.l.bf16 %v1259_v13 }
 0x43e   : > { %v517_v23 = vmul.f32 1.442695, %v511_v20  ;;  %v1180_v51 = vpack.c.bf16 %v1261_v49, %v1260_v50 }
 0x43f   : > { %v508_v21 = vpop.xlane.xlu0 %507  ;;  %v1264_v52 = vpop.permute.xlu1 %1263 }
 0x440   : > { %v512_v22 = vsub.f32 %v495_v2, %v508_v21  ;;  %v1266_v53 = vunpack.i.h.bf16 %v1264_v52  ;;  %v1265_v54 = vunpack.i.l.bf16 %v1264_v52  ;;  %1181 = vmatpush3.bf16.msra.mxu1 %v1180_v51 }
 0x441   : > { %1182 = vmatprep.subr.bf16.mxu1 %v1400_v10 }
 0x442   : > { %v519_v24 = vmul.f32 1.442695, %v512_v22  ;;  %v1183_v55 = vpack.c.bf16 %v1266_v53, %v1265_v54  ;;  %v258_v22 = vld [vmem:[%s1735_s4 + $0x8] sm:$0xff]  ;;  %v778_v54 = vsub.s32 6, %v1564_v25 }
 0x444   : > { %1285 = vpow2.f32 %v519_v24  ;;  %1184 = vmatpush3.bf16.msra.mxu1 %v1183_v55  ;;  %v779_v55 = vrot.slane %v1570_v27, %v778_v54 }
 0x445   : > { %v1282_v26 = vpop.eup %1281  ;;  %1287 = vpow2.f32 %v517_v23  ;;  %1191 = vmatprep.subr.bf16.mxu1 %v1400_v10  ;;  %v262_v23 = vld [vmem:[%s1735_s4 + $0x28] sm:$0xff] }
 0x446   : > { %v524_v28 = vsel %vm496_vm4, %v1282_v26, 0.0  ;;  %v1284_v29 = vpop.eup %1283 }
 0x447   : > { %525 = vadd.xlane.f32.xlu0 %v524_v28  ;;  %v521_v30 = vsel %vm496_vm4, %v1284_v29, 0.0 }
 0x44b   : > { %522 = vadd.xlane.f32.xlu0 %v521_v30 }
 0x44e   : > { %v1286_v31 = vpop.eup %1285 }
 0x44f   : > { %v530_v32 = vsel %vm496_vm4, %v1286_v31, 0.0  ;;  %v1288_v33 = vpop.eup %1287 }
 0x450   : > { %531 = vadd.xlane.f32.xlu0 %v530_v32  ;;  %v527_v34 = vsel %vm496_vm4, %v1288_v33, 0.0 }
 0x454   : > { %528 = vadd.xlane.f32.xlu0 %v527_v34 }
 0x46a   : > { %541 = vrot.lane.b32.xlu0 %v1580_v39, %s1404_s6 }
 0x4d4   : > { %v526_v36 = vpop.xlane.xlu0 %525 }
 0x4d5   : > { %1289 = vrcp.f32 %v526_v36 }
 0x4d8   : > { %v523_v37 = vpop.xlane.xlu0 %522 }
 0x4d9   : > { %1291 = vrcp.f32 %v523_v37 }
 0x4dd   : > { %v532_v40 = vpop.xlane.xlu0 %531 }
 0x4de   : > { %1293 = vrcp.f32 %v532_v40 }
 0x4df   : > { %v1290_v42 = vpop.eup %1289 }
 0x4e0   : > { %v536_v48 = vmul.f32 %v1290_v42, %v1282_v26  ;;  %v264_v26 = vld [vmem:[%s1735_s4 + $0x38] sm:$0xff] }
 0x4e1   : > { %v529_v41 = vpop.xlane.xlu0 %528  ;;  %v1189_v28 = vpack.c.bf16 %v264_v26, %v262_v23  ;;  %v1272_v30 = vpack.i.bf16 %v264_v26, %v262_v23 }
 0x4e2   : > { %1295 = vrcp.f32 %v529_v41  ;;  %v768_v41 = vsub.s32 2, %v1564_v25 }
 0x4e3   : > { %v1292_v45 = vpop.eup %1291 }
 0x4e4   : > { %v534_v39 = vmul.f32 %v1292_v45, %v1284_v29 }
 0x4e5   : > { %v542_v46 = vpop.permute.xlu0 %541 }
 0x4e6   : > { %1132 = vmatprep.subr.mxu0 %v542_v46  ;;  %1134 = vmatprep.mubr.msk.f32.mxu0 %vm496_vm4, %v534_v39 }
 0x4e7   : > { %1133 = vmatpush3.msra.mxu0 %v542_v46  ;;  %v773_v46 = vsub.s32 3, %v1564_v25 }
 0x4e8   : > { %1135 = vmatmul.mubr.msk.f32.vlgmr.msra.gmra.mrb[2].mxu0 %vm496_vm4, %v536_v48  ;;  %1185 = vmatprep.subr.bf16.mxu0 %v1400_v10  ;;  %v1294_v7 = vpop.eup %1293 }
 0x4e9   : > { %v540_v11 = vmul.f32 %v1294_v7, %v1286_v31  ;;  %v774_v50 = vrot.slane %v1570_v27, %v773_v46 }
 0x4ec   : > { %v1296_v8 = vpop.eup %1295 }
 0x4ed   : > { %v538_v9 = vmul.f32 %v1296_v8, %v1288_v33  ;;  %v769_v8 = vrot.slane %v1570_v27, %v768_v41 }
 0x4ef   : > { %1137 = vmatprep.mubr.msk.f32.mxu0 %vm496_vm4, %v538_v9 }
 0x4f0   : > { %1138 = vmatmul.mubr.msk.f32.gmra.mrb[4].mxu0 %vm496_vm4, %v540_v11 }
 0x4f1   : > { %1159 = vmatprep.mubr.msk.f32.mxu0 %vm1401_vm1, %v1402_v14 }
 0x5bb   : > { %v1136_v56 = vpop.f32.mrb[2].mxu0 }
 0x5bc   : > { %v642_v57 = vmul.f32 %v1136_v56, %v1586_v43  ;;  %v622_v58 = vpop.f32.mrb[3].mxu0 }
 0x5bd   : > { %v641_v59 = vmul.f32 %v622_v58, %v1578_v38  ;;  %v654_v38 = vsub.s32 5, %v1564_v25 }
 0x5be   : > { %v646_v60 = vsel %vm273_vm0, %v642_v57, 0.0 }
 0x5bf   : > { %v645_v61 = vsel %vm273_vm0, %v641_v59, 0.0  ;;  %v655_v12 = vrot.slane %v1570_v27, %v654_v38 }
 0x5c0   : > { %v647_v62 = vadd.f32 %v646_v60, %v645_v61 }
 0x5c3   : > { %v1139_v63 = vpop.f32.mrb[4].mxu0 }
 0x5c4   : > { %v632_v1 = vpop.f32.mrb[5].mxu0  ;;  %v644_v2 = vmul.f32 %v1139_v63, %v1597_v47 }
 0x5c5   : > { %v643_v3 = vmul.f32 %v632_v1, %v1589_v44 }
 0x5c6   : > { %v650_v6 = vsel %vm273_vm0, %v644_v2, 0.0 }
 0x5c7   : > { %v648_v4 = vsel %vm273_vm0, %v643_v3, 0.0 }
 0x5c8   : > { %v649_v5 = vadd.f32 %v648_v4, %v647_v62 }
 0x5ca   : > { %v651_v43 = vadd.f32 %v650_v6, %v649_v5 }
 0x5cc   : > { %1149 = vmatmul.mubr.msk.f32.vlgmr.msra.gmra.mrb[4].mxu1 %vm273_vm0, %v651_v43 }
 0x5cd   : > { %1170 = vmatprep.mubr.msk.f32.mxu1 %vm1401_vm1, %v1402_v14 }
 0x69f   : > { %v741_v15 = vpop.f32.mrb[4].mxu1 }
 0x6a0   : > { %v742_v16 = vadd.f32 %v741_v15, %v655_v12  ;;  %v1150_v47 = vpop.f32.mrb[5].mxu1 }
 0x6a2   : > { %v1648_v44 = vadd.f32 %v742_v16, %v1528_v0  ;;  %v260_v0 = vld [vmem:[%s1735_s4 + $0x18] sm:$0xff] }
 0x6a3   : > { %v1186_v24 = vpack.c.bf16 %v260_v0, %v258_v22  ;;  %v1267_v29 = vpack.i.bf16 %v260_v0, %v258_v22 }
 0x6a4   : > { %v746_v17 = vsel %vm273_vm0, %v1648_v44, 0.0 }
 0x6a5   : > { %747 = vadd.xlane.f32.xlu0 %v746_v17  ;;  %1187 = vmatpush3.bf16.msra.mxu0 %v1186_v24 }
 0x6a6   : > { %1188 = vmatprep.subr.bf16.mxu0 %v1400_v10 }
 0x6a9   : > { %1190 = vmatpush3.bf16.msra.mxu0 %v1189_v28 }
 0x6bb   : > { %1268 = vrot.lane.b32.xlu0 %v1267_v29, %s1404_s6 }
 0x732   : > { %v748_v18 = vpop.xlane.xlu0 %747 }
 0x733   : > { %v749_v19 = vmul.f32 0.03125, %v748_v18 }
 0x735   : > { %v750_v20 = vsub.f32 %v1648_v44, %v749_v19 }
 0x736   : > { %v1269_v42 = vpop.permute.xlu0 %1268 }
 0x737   : > { %v751_v21 = vmul.f32 %v750_v20, %v750_v20  ;;  %v1271_v45 = vunpack.i.h.bf16 %v1269_v42  ;;  %v1270_v39 = vunpack.i.l.bf16 %v1269_v42 }
 0x739   : > { %v752_v14 = vsel %vm273_vm0, %v751_v21, 0.0  ;;  %v1192_v7 = vpack.c.bf16 %v1271_v45, %v1270_v39 }
 0x73a   : > { %753 = vadd.xlane.f32.xlu1 %v752_v14 }
 0x73b   : > { %1194 = vmatpush3.bf16.xpose.msk.msra.mxu1 %vm1193_vm8, %v1192_v7 }
 0x73c   : > { %1195 = vmatprep.subr.bf16.mxu1 %v1400_v10  ;;  %v856_v10 = vsub.s32 7, %v1564_v25 }
 0x73e   : > { %v857_v60 = vrot.slane %v1570_v27, %v856_v10 }
 0x74b   : > { %1273 = vrot.lane.b32.xlu1 %v1272_v30, %s1404_s6 }
 0x7c7   : > { %v754_v31 = vpop.xlane.xlu1 %753 }
 0x7c8   : > { %v755_v32 = vmul.f32 0.032258064, %v754_v31 }
 0x7ca   : > { %1297 = vrsqrt.f32 %v755_v32  ;;  %vm758_vm5 = vcmp.eq.f32.partialorder %v755_v32, inf  ;;  %v761_v35 = vand.u32 2147483648, %v755_v32  ;;  %vm760_vm6 = vcmp.eq.f32.partialorder %v755_v32, 0.0 }
 0x7cb   : > { %v1274_v48 = vpop.permute.xlu1 %1273 }
 0x7cc   : > { %v1276_v11 = vunpack.i.h.bf16 %v1274_v48  ;;  %v1275_v13 = vunpack.i.l.bf16 %v1274_v48 }
 0x7ce   : > { %v1196_v52 = vpack.c.bf16 %v1276_v11, %v1275_v13 }
 0x7d0   : > { %1198 = vmatpush3.bf16.xpose.msk.msra.mxu1 %vm1193_vm8, %v1196_v52 }
 0x7d4   : > { %v1298_v33 = vpop.eup %1297 }
 0x7d5   : > { %v757_v34 = vmul.f32 %v1298_v33, %v755_v32 }
 0x7d7   : > { %v759_v36 = vsel %vm758_vm5, %v755_v32, %v757_v34 }
 0x7d8   : > { %v762_v37 = vsel %vm760_vm6, %v761_v35, %v759_v36 }
 0x7d9   : > { %v763_v40 = vadd.f32 1e-06, %v762_v37 }
 0x7db   : > { %1299 = vrcp.f32 %v763_v40 }
 0x7e5   : > { %v1300_v9 = vpop.eup %1299 }
 0x7e6   : > { %v765_v49 = vmul.f32 %v1300_v9, %v750_v20 }
 0x7e8   : > { %v770_v51 = vmul.f32 %v769_v8, %v765_v49 }
 0x7ea   : > { %v775_v53 = vadd.f32 %v774_v50, %v770_v51 }
 0x7ec   : > { %1160 = vmatmul.mubr.msk.f32.vlgmr.msra.gmra.mrb[6].mxu0 %vm273_vm0, %v775_v53 }
 0x8bf   : > { %v849_v56 = vpop.f32.mrb[6].mxu0 }
 0x8c0   : > { %v850_v57 = vadd.f32 %v849_v56, %v779_v55  ;;  %v1161_v58 = vpop.f32.mrb[7].mxu0 }
 0x8c2   : > { %v853_v59 = vmax.f32 %v850_v57, 0.0 }
 0x8c4   : > { %1171 = vmatmul.mubr.msk.f32.vlgmr.msra.gmra.mrb[6].mxu1 %vm870_vm7, %v853_v59 }
 0x997   : > { %v948_v61 = vpop.f32.mrb[6].mxu1 }
 0x998   : > { %v949_v62 = vadd.f32 %v948_v61, %v857_v60  ;;  %v1172_v63 = vpop.f32.mrb[7].mxu1 }
 0x99a   : > { %v952_v1 = vadd.f32 %v949_v62, %v1648_v44 }
 0x99c   : > { %953 = vst.msk [vmem:[%s245_s9] sm:$0xff] %vm273_vm0, %v952_v1 }
 0x99d   : > { %1342 = shalt.err (!%p1339_p7)
}
 0x99e   : > { %s1343_s15 = scalar_lea.hbm %s1688_s30, 128  ;;  %s1347_s23 = scalar_lea.hbm %s1736_s5, 256 }
 0x99f   : > { %p1344_p8 = scmp.ne.s32.totalorder %s1688_s30, %s1343_s15  ;;  %p1348_p1 = scmp.lt.u32.totalorder %s1688_s30, %s1736_s5 }
 0x9a0   : > { %p1349_p0 = scmp.lt.u32.totalorder %s1347_s23, %s1343_s15  ;;  %p1351_p6 = scmp.lt.u32.totalorder %s1343_s15, %s1688_s30 }
 0x9a1   : > { %p1345_p11 = pnand %p1344_p8, %p1747_p9 }
 0x9a2   : > { %p1350_p5 = por %p1349_p0, %p1348_p1 }
 0x9a3   : > { %p1346_p13 = pneg %p1345_p11 }
 0x9a4   : > { %p1352_p10 = por %p1351_p6, %p1350_p5 }
 0x9a6   : > { %p1353_p12 = pnand %p1352_p10, %p1346_p13 }
 0x9a8   : > { %1356 = shalt.err (!%p1353_p12)
}
 0x9a9   : > { %1203 = dma.vmem_to_hbm [thread:$0]  (%p1747_p9), %s1690_s10, 128, %s1688_s30, %s955_s11  }
 0x9aa PF: > { %p1215_p2 = scmp.ge.s32.totalorder %s1395_s21, 2  ;;  %s980_s8 = sand.u32 1, %s1383_s18  }
 0x9ab   : > { %p1748_p3 = scmp.ne.s32.totalorder %s1741_s29, 0  ;;  %s981_s9 = scalar_lea.sflag [#allocation4], %s980_s8 }
 0x9ad   : > { %p1210_p4 = pnand %p1215_p2, %p1748_p3 }
 0x9af   : > { %1378 = dma.done.wait (!%p1210_p4), %s981_s9, 128  }
 0x9b0   : > { %1380 = vsyncadd (!%p1210_p4), %s981_s9, 4294967168  ;;  %p16_p7 = scmp.ge.s32.totalorder %s1462_s24, 4   ;;  %s1749_s18 = smov %s1387_s19 }
 0x9b1   : > { %s1750_s19 = smov %s1391_s20  ;;  %s1751_s20 = smov %s1473_s27 }
 0x9b2   : > { %s1752_s21 = smov %s1462_s24  ;;  %18 = sbr.rel (!%p16_p7) target bundleno = 4 (0x4), region = 83 }
 0x9b9   :  { %986 = vsyncpa [#allocation3], 1 }
 0x9ba   :  { %988 = vsyncpa [#allocation3 + $0x1], 1 }
 0x9bb   :  { %989 = vsyncpa [#allocation4], 1 }
 0x9bc   :  { %991 = vsyncpa [#allocation4 + $0x1], 1 }

</bundles_post_ra>
